<compile_context>
chip_gen: v6e
topology: v6e:2x2x1
jax: 0.10.0
libtpu: 0.0.40
codegen_flags: <defaults>
</compile_context>

<pallas_src>
import functools

import jax
import jax.numpy as jnp
from jax import lax
from jax.experimental import pallas as pl
from jax.experimental.pallas import tpu as pltpu


# ----------------------------------------------------------------------------
# Helpers
# ----------------------------------------------------------------------------
def _vmem_limit_bytes():
    """Scoped-VMEM limit: ~3/4 of physical (v5e/v6e: 128 MiB, v7x: 64 MiB)."""
    try:
        cap = int(pltpu.get_tpu_info().vmem_capacity_bytes)
    except Exception:
        cap = 64 * 1024 * 1024          # conservative fallback (v7x-sized)
    return max(32 * 1024 * 1024, min((cap * 3) // 4, 100 * 1024 * 1024))


def _const_spec(arr):
    """BlockSpec for a grid-invariant weight/bias: full block, single buffer."""
    nd = arr.ndim
    idx = lambda *_g, _nd=nd: (0,) * _nd
    try:
        return pl.BlockSpec(arr.shape, idx, pipeline_mode=pl.Buffered(1))
    except Exception:                    # older jax: no pipeline_mode kwarg
        return pl.BlockSpec(arr.shape, idx)


# ----------------------------------------------------------------------------
# Kernel 1: key / value projection (phi(f_k), f_down(f_k)), tiled over N
# ----------------------------------------------------------------------------
def kv_projection_kernel(fk_ref, kv1_w, kv1_b, phi2_w, phi2_b,
                         k_ref, v_ref, *, ck):
    f32, bf16 = jnp.float32, jnp.bfloat16
    fk = fk_ref[0]                                                 # (Cin, TN) bf16
    # fused [phi layer 1 | f_down] projection: (2Ck, Cin) @ (Cin, TN)
    kv = jnp.dot(kv1_w[...], fk, preferred_element_type=f32) + kv1_b[...]
    kv = jnp.maximum(kv, 0.0)                                      # (2Ck, TN) f32
    v = kv[ck:, :]                                                 # f_down output
    k = jnp.dot(phi2_w[...], kv[:ck, :].astype(bf16),
                preferred_element_type=f32) + phi2_b[...]
    k = jnp.maximum(k, 0.0)                                        # (Ck, TN)
    k_ref[0] = k.astype(bf16)                                      # lane-dense stores
    v_ref[0] = v.astype(bf16)


# ----------------------------------------------------------------------------
# Kernel 2: attention (query projection, softmax, context, f_up)
# ----------------------------------------------------------------------------
def attention_kernel(x_ref, k_ref, vt_ref,
                     psi1_w, psi1_b, psi2_w, psi2_b, fu_w, fu_b,
                     out_ref):
    f32, bf16 = jnp.float32, jnp.bfloat16

    # query = psi(x): (Cin, TQ) -> (Ck, TQ)
    x = x_ref[0]                                                   # bf16
    q = jnp.maximum(
        jnp.dot(psi1_w[...], x, preferred_element_type=f32) + psi1_b[...], 0.0)
    q = jnp.maximum(
        jnp.dot(psi2_w[...], q.astype(bf16), preferred_element_type=f32)
        + psi2_b[...], 0.0)

    # scores[t, n] = sum_c q[c, t] * k[c, n]
    # (NO 1/sqrt(d) scaling -- intentional, matches the PyTorch reference.)
    s = lax.dot_general(q.astype(bf16), k_ref[0],
                        dimension_numbers=(((0,), (0,)), ((), ())),
                        preferred_element_type=f32)                # (TQ, N)

    # softmax over keys; normalization deferred past the PV matmul.
    s = s - jnp.max(s, axis=-1, keepdims=True)
    p = jnp.exp(s)                                                 # f32 (v5e-safe)
    l = jnp.sum(p, axis=-1, keepdims=True)                         # (TQ, 1)

    # unnormalized context in natural MXU orientation: (TQ, N) @ (N, Ck)
    ctx_t = jnp.dot(p.astype(bf16), vt_ref[0],
                    preferred_element_type=f32)                    # (TQ, Ck)
    # deferred normalization on the small (TQ, Ck) tensor (EUP reciprocal).
    ctx_t = ctx_t * pl.reciprocal(l, approx=True)

    # f_up: out[o, t] = sum_c fu_w[o, c] * ctx_t[t, c]   -> (Cin, TQ)
    out = lax.dot_general(fu_w[...], ctx_t.astype(bf16),
                          dimension_numbers=(((1,), (1,)), ((), ())),
                          preferred_element_type=f32)
    out = jnp.maximum(out + fu_b[...], 0.0)
    out_ref[0] = out.astype(out_ref.dtype)                         # lane-dense store


# ----------------------------------------------------------------------------
# Wrapper
# ----------------------------------------------------------------------------
def object_attention(x_nchw, fk_nchw, params, *, tq=None, tn=None):
    """x_nchw, fk_nchw: (B, Cin, H, W).  Returns (B, Cin, H, W)."""
    B, Cin, H, W = x_nchw.shape
    N = H * W
    Ck = params["psi1_w"].shape[0]
    assert params["psi2_w"].shape[1] == Ck, \
        "reference module wiring requires key_channels == in_channels"
    assert Ck % 8 == 0, "key_channels must be a multiple of 8 (sublane slicing)"

    bf16 = jnp.bfloat16

    # Tile sizes: collapse to a single tile for small N; otherwise bound the
    # (TQ, N) softmax slab (re-derive per generation if needed).
    if tq is None:
        tq = N if N <= 1024 else 512
    tq = min(tq, N)
    assert N % tq == 0, "query tile must divide H*W"
    if tn is None:
        tn = N if N <= 2048 else 1024
    tn = min(tn, N)
    assert N % tn == 0, "kv tile must divide H*W"

    # channels-first, spatially flattened; cast to bf16 once (halves DMA bytes)
    x = x_nchw.reshape(B, Cin, N).astype(bf16)
    fk = fk_nchw.reshape(B, Cin, N).astype(bf16)

    vmem_limit = _vmem_limit_bytes()

    # ---- kernel 1: key / value projection ---------------------------------
    kv1_w = jnp.concatenate([params["phi1_w"], params["fd_w"]], axis=0).astype(bf16)
    kv1_b = jnp.concatenate([params["phi1_b"], params["fd_b"]], axis=0)
    kv_weights = [kv1_w, kv1_b, params["phi2_w"].astype(bf16), params["phi2_b"]]

    k_full, v_full = pl.pallas_call(
        functools.partial(kv_projection_kernel, ck=Ck),
        out_shape=(jax.ShapeDtypeStruct((B, Ck, N), bf16),
                   jax.ShapeDtypeStruct((B, Ck, N), bf16)),
        grid_spec=pltpu.PrefetchScalarGridSpec(
            num_scalar_prefetch=0,
            grid=(B, N // tn),
            in_specs=[pl.BlockSpec((1, Cin, tn), lambda b, j: (b, 0, j))]
                    + [_const_spec(w) for w in kv_weights],
            out_specs=[pl.BlockSpec((1, Ck, tn), lambda b, j: (b, 0, j)),
                       pl.BlockSpec((1, Ck, tn), lambda b, j: (b, 0, j))],
        ),
        compiler_params=pltpu.CompilerParams(
            dimension_semantics=("parallel", "parallel"),
            vmem_limit_bytes=vmem_limit),
    )(fk, *kv_weights)

    # Transpose value once per batch (small Ck x N bf16 tensor, done by XLA)
    # so the attention kernel's P @ V matmul is in natural MXU orientation.
    v_t = jnp.swapaxes(v_full, 1, 2)                               # (B, N, Ck) bf16

    # ---- kernel 2: attention ----------------------------------------------
    attn_weights = [params["psi1_w"].astype(bf16), params["psi1_b"],
                    params["psi2_w"].astype(bf16), params["psi2_b"],
                    params["fu_w"].astype(bf16), params["fu_b"]]

    out = pl.pallas_call(
        attention_kernel,
        out_shape=jax.ShapeDtypeStruct((B, Cin, N), x_nchw.dtype),
        grid_spec=pltpu.PrefetchScalarGridSpec(
            num_scalar_prefetch=0,
            grid=(B, N // tq),
            in_specs=[pl.BlockSpec((1, Cin, tq), lambda b, i: (b, 0, i)),
                      pl.BlockSpec((1, Ck, N), lambda b, i: (b, 0, 0)),
                      pl.BlockSpec((1, N, Ck), lambda b, i: (b, 0, 0))]
                    + [_const_spec(w) for w in attn_weights],
            out_specs=pl.BlockSpec((1, Cin, tq), lambda b, i: (b, 0, i)),
        ),
        compiler_params=pltpu.CompilerParams(
            dimension_semantics=("parallel", "parallel"),
            vmem_limit_bytes=vmem_limit),
    )(x, k_full, v_t, *attn_weights)

    # (B, Cin, N) is already channel-first: reshape straight to NCHW.
    return out.reshape(B, Cin, H, W)


# ----------------------------------------------------------------------------
# Deterministic parameter construction (convbn = 1x1 Conv(no bias) + BN(eval),
# folded into W_eff (Cout, Cin) and b_eff (Cout, 1), channels-first)
# ----------------------------------------------------------------------------
def make_convbn_params(key, cin, cout, eps=1e-5):
    kw, kg, kb, km, kv = jax.random.split(key, 5)
    w = jax.random.normal(kw, (cout, cin), jnp.float32) * (1.0 / jnp.sqrt(cin))
    gamma = 0.5 + jax.random.uniform(kg, (cout,), jnp.float32)
    beta = 0.1 * jax.random.normal(kb, (cout,), jnp.float32)
    mean = 0.1 * jax.random.normal(km, (cout,), jnp.float32)
    var = 0.5 + jax.random.uniform(kv, (cout,), jnp.float32)
    scale = gamma / jnp.sqrt(var + eps)
    w_eff = w * scale[:, None]                 # (cout, cin)
    b_eff = (beta - mean * scale)[:, None]     # (cout, 1)
    return w_eff, b_eff


def init_params(key, in_channels, key_channels):
    ks = jax.random.split(key, 6)
    psi1_w, psi1_b = make_convbn_params(ks[0], in_channels, key_channels)
    psi2_w, psi2_b = make_convbn_params(ks[1], in_channels, key_channels)
    phi1_w, phi1_b = make_convbn_params(ks[2], in_channels, key_channels)
    phi2_w, phi2_b = make_convbn_params(ks[3], in_channels, key_channels)
    fd_w, fd_b = make_convbn_params(ks[4], in_channels, key_channels)
    fu_w, fu_b = make_convbn_params(ks[5], key_channels, in_channels)
    return dict(psi1_w=psi1_w, psi1_b=psi1_b, psi2_w=psi2_w, psi2_b=psi2_b,
                phi1_w=phi1_w, phi1_b=phi1_b, phi2_w=phi2_w, phi2_b=phi2_b,
                fd_w=fd_w, fd_b=fd_b, fu_w=fu_w, fu_b=fu_b)


# ----------------------------------------------------------------------------
# Pure-JAX references
#   reference_f32  : exact f32 math, mirrors the PyTorch forward.
#   reference_bf16 : same math with the kernel's bf16 matmul operands, f32
#                    accumulation and deferred softmax normalization.
# ----------------------------------------------------------------------------
def reference_f32(x_nchw, fk_nchw, p):
    B, Cin, H, W = x_nchw.shape
    N = H * W
    x = x_nchw.reshape(B, Cin, N)
    fk = fk_nchw.reshape(B, Cin, N)
    relu = lambda t: jnp.maximum(t, 0.0)

    def proj(w, b, t):
        return relu(jnp.einsum("oc,bcn->bon", w, t) + b[None])

    q = proj(p["psi2_w"], p["psi2_b"], proj(p["psi1_w"], p["psi1_b"], x))
    k = proj(p["phi2_w"], p["phi2_b"], proj(p["phi1_w"], p["phi1_b"], fk))
    v = proj(p["fd_w"], p["fd_b"], fk)
    s = jnp.einsum("bct,bcn->btn", q, k)
    s = jax.nn.softmax(s, axis=-1)
    ctx = jnp.einsum("bcn,btn->bct", v, s)
    out = relu(jnp.einsum("oc,bct->bot", p["fu_w"], ctx) + p["fu_b"][None])
    return out.reshape(B, Cin, H, W)


def reference_bf16(x_nchw, fk_nchw, p):
    bf16, f32 = jnp.bfloat16, jnp.float32
    B, Cin, H, W = x_nchw.shape
    N = H * W
    x = x_nchw.reshape(B, Cin, N)
    fk = fk_nchw.reshape(B, Cin, N)
    relu = lambda t: jnp.maximum(t, 0.0)

    def mm(w, a):   # bf16 operands, f32 accumulation
        return jnp.einsum("oc,bcn->bon", w.astype(bf16), a.astype(bf16),
                          preferred_element_type=f32)

    q = relu(mm(p["psi1_w"], x) + p["psi1_b"][None])
    q = relu(mm(p["psi2_w"], q) + p["psi2_b"][None])
    k = relu(mm(p["phi1_w"], fk) + p["phi1_b"][None])
    k = relu(mm(p["phi2_w"], k) + p["phi2_b"][None])
    v = relu(mm(p["fd_w"], fk) + p["fd_b"][None])
    s = jnp.einsum("bct,bcn->btn", q.astype(bf16), k.astype(bf16),
                   preferred_element_type=f32)
    s = s - jnp.max(s, axis=-1, keepdims=True)
    pr = jnp.exp(s)
    l = jnp.sum(pr, axis=-1, keepdims=True)
    ctx = jnp.einsum("btn,bcn->btc", pr.astype(bf16), v.astype(bf16),
                     preferred_element_type=f32) / l            # (B, T, Ck)
    out = relu(jnp.einsum("oc,btc->bot", p["fu_w"].astype(bf16),
                          ctx.astype(bf16), preferred_element_type=f32)
               + p["fu_b"][None])
    return out.reshape(B, Cin, H, W)


if __name__ == "__main__":
    B, Cin, H, W = 2, 32, 16, 16
    Ck = Cin  # required by the reference module's layer wiring (see NOTE)

    root = jax.random.PRNGKey(0)
    kx, kf, kp = jax.random.split(root, 3)
    x = jax.random.normal(kx, (B, Cin, H, W), jnp.float32)
    f_k = jax.random.normal(kf, (B, Cin, H, W), jnp.float32)
    params = init_params(kp, Cin, Ck)

    ref_mp = jax.block_until_ready(reference_bf16(x, f_k, params))
    ref = jax.block_until_ready(reference_f32(x, f_k, params))

    # Default tiling: N = 256 -> a single query / kv tile per batch element.
    out = jax.block_until_ready(object_attention(x, f_k, params))
    assert out.shape == (B, Cin, H, W)
    assert jnp.allclose(out, ref_mp, rtol=2e-2, atol=2e-2), \
        "mismatch (single-tile) vs bf16-precision reference"
    assert jnp.allclose(out, ref, rtol=1e-1, atol=1e-1), \
        "mismatch (single-tile) vs f32 reference"

    # Multi-tile path: tq = tn = 128 -> 2 query tiles and 2 kv tiles / batch.
    out_tiled = jax.block_until_ready(
        object_attention(x, f_k, params, tq=128, tn=128))
    assert jnp.allclose(out_tiled, ref_mp, rtol=2e-2, atol=2e-2), \
        "mismatch (tiled) vs bf16-precision reference"

    print("KERNEL_OK")
</pallas_src>

<mosaic_0001>
module attributes {stable_mosaic.version = 11 : i64} {
  func.func @kv_projection_kernel(%arg0: i32, %arg1: i32, %arg2: memref<1x32x256xbf16, #tpu.memory_space<vmem>>, %arg3: memref<64x32xbf16, #tpu.memory_space<vmem>>, %arg4: memref<64x1xf32, #tpu.memory_space<vmem>>, %arg5: memref<32x32xbf16, #tpu.memory_space<vmem>>, %arg6: memref<32x1xf32, #tpu.memory_space<vmem>>, %arg7: memref<1x32x256xbf16, #tpu.memory_space<vmem>>, %arg8: memref<1x32x256xbf16, #tpu.memory_space<vmem>>) attributes {dimension_semantics = [#tpu.dimension_semantics<parallel>, #tpu.dimension_semantics<parallel>], iteration_bounds = array<i64: 2, 1>, scalar_prefetch = 0 : i64, scratch_operands = 0 : i64, tpu.core_type = #tpu.core_type<tc>, window_params = [{transform_indices = @transform_0, window_bounds = array<i64: 1, 32, 256>}, {pipeline_mode = #tpu.pipeline_mode<synchronous>, transform_indices = @transform_1, window_bounds = array<i64: 64, 32>}, {pipeline_mode = #tpu.pipeline_mode<synchronous>, transform_indices = @transform_2, window_bounds = array<i64: 64, 1>}, {pipeline_mode = #tpu.pipeline_mode<synchronous>, transform_indices = @transform_3, window_bounds = array<i64: 32, 32>}, {pipeline_mode = #tpu.pipeline_mode<synchronous>, transform_indices = @transform_4, window_bounds = array<i64: 32, 1>}, {transform_indices = @transform_5, window_bounds = array<i64: 1, 32, 256>}, {transform_indices = @transform_6, window_bounds = array<i64: 1, 32, 256>}]} {
    %c0 = arith.constant 0 : index
    %c0_0 = arith.constant 0 : index
    %c0_1 = arith.constant 0 : index
    %0 = vector.load %arg2[%c0, %c0_0, %c0_1] : memref<1x32x256xbf16, #tpu.memory_space<vmem>>, vector<1x32x256xbf16>
    %1 = vector.shape_cast %0 : vector<1x32x256xbf16> to vector<32x256xbf16>
    %c0_2 = arith.constant 0 : index
    %c0_3 = arith.constant 0 : index
    %2 = vector.load %arg3[%c0_2, %c0_3] : memref<64x32xbf16, #tpu.memory_space<vmem>>, vector<64x32xbf16>
    %cst = arith.constant dense<0.000000e+00> : vector<64x256xf32>
    %3 = tpu.matmul %2, %1, %cst {dimension_numbers = #tpu.dot_dimension_numbers<[1], [0], [0], [1], [0, 0, 1, 1], [], []>} : vector<64x32xbf16>, vector<32x256xbf16>, vector<64x256xf32> -> vector<64x256xf32>
    %c0_4 = arith.constant 0 : index
    %c0_5 = arith.constant 0 : index
    %4 = vector.load %arg4[%c0_4, %c0_5] : memref<64x1xf32, #tpu.memory_space<vmem>>, vector<64x1xf32>
    %5 = vector.broadcast %4 : vector<64x1xf32> to vector<64x256xf32>
    %6 = arith.addf %3, %5 : vector<64x256xf32>
    %cst_6 = arith.constant 0.000000e+00 : f32
    %7 = vector.broadcast %cst_6 : f32 to vector<64x256xf32>
    %8 = arith.maximumf %6, %7 : vector<64x256xf32>
    %9 = vector.extract_strided_slice %8 {offsets = [32, 0], sizes = [32, 256], strides = [1, 1]} : vector<64x256xf32> to vector<32x256xf32>
    %c0_7 = arith.constant 0 : index
    %c0_8 = arith.constant 0 : index
    %10 = vector.load %arg5[%c0_7, %c0_8] : memref<32x32xbf16, #tpu.memory_space<vmem>>, vector<32x32xbf16>
    %11 = vector.extract_strided_slice %8 {offsets = [0, 0], sizes = [32, 256], strides = [1, 1]} : vector<64x256xf32> to vector<32x256xf32>
    %12 = arith.truncf %11 : vector<32x256xf32> to vector<32x256xbf16>
    %cst_9 = arith.constant dense<0.000000e+00> : vector<32x256xf32>
    %13 = tpu.matmul %10, %12, %cst_9 {dimension_numbers = #tpu.dot_dimension_numbers<[1], [0], [0], [1], [0, 0, 1, 1], [], []>} : vector<32x32xbf16>, vector<32x256xbf16>, vector<32x256xf32> -> vector<32x256xf32>
    %c0_10 = arith.constant 0 : index
    %c0_11 = arith.constant 0 : index
    %14 = vector.load %arg6[%c0_10, %c0_11] : memref<32x1xf32, #tpu.memory_space<vmem>>, vector<32x1xf32>
    %15 = vector.broadcast %14 : vector<32x1xf32> to vector<32x256xf32>
    %16 = arith.addf %13, %15 : vector<32x256xf32>
    %cst_12 = arith.constant 0.000000e+00 : f32
    %17 = vector.broadcast %cst_12 : f32 to vector<32x256xf32>
    %18 = arith.maximumf %16, %17 : vector<32x256xf32>
    %19 = arith.truncf %18 : vector<32x256xf32> to vector<32x256xbf16>
    %c0_13 = arith.constant 0 : index
    %c0_14 = arith.constant 0 : index
    %c0_15 = arith.constant 0 : index
    %20 = vector.load %arg7[%c0_13, %c0_14, %c0_15] : memref<1x32x256xbf16, #tpu.memory_space<vmem>>, vector<1x32x256xbf16>
    %21 = vector.shape_cast %20 : vector<1x32x256xbf16> to vector<32x256xbf16>
    %22 = vector.shape_cast %19 : vector<32x256xbf16> to vector<1x32x256xbf16>
    tpu.vector_store %arg7[%c0_13, %c0_14, %c0_15], %22 {strides = array<i32>} : memref<1x32x256xbf16, #tpu.memory_space<vmem>>, vector<1x32x256xbf16>,
    %23 = arith.truncf %9 : vector<32x256xf32> to vector<32x256xbf16>
    %c0_16 = arith.constant 0 : index
    %c0_17 = arith.constant 0 : index
    %c0_18 = arith.constant 0 : index
    %24 = vector.load %arg8[%c0_16, %c0_17, %c0_18] : memref<1x32x256xbf16, #tpu.memory_space<vmem>>, vector<1x32x256xbf16>
    %25 = vector.shape_cast %24 : vector<1x32x256xbf16> to vector<32x256xbf16>
    %26 = vector.shape_cast %23 : vector<32x256xbf16> to vector<1x32x256xbf16>
    tpu.vector_store %arg8[%c0_16, %c0_17, %c0_18], %26 {strides = array<i32>} : memref<1x32x256xbf16, #tpu.memory_space<vmem>>, vector<1x32x256xbf16>,
    return
  }
  func.func @transform_0(%arg0: i32, %arg1: i32) -> (i32, i32, i32) {
    %c0_i32 = arith.constant 0 : i32
    %c0_i32_0 = arith.constant 0 : i32
    return %arg0, %c0_i32, %arg1 : i32, i32, i32
  }
  func.func @transform_1(%arg0: i32, %arg1: i32) -> (i32, i32) {
    %c0_i32 = arith.constant 0 : i32
    %c0_i32_0 = arith.constant 0 : i32
    %c0_i32_1 = arith.constant 0 : i32
    return %c0_i32, %c0_i32_0 : i32, i32
  }
  func.func @transform_2(%arg0: i32, %arg1: i32) -> (i32, i32) {
    %c0_i32 = arith.constant 0 : i32
    %c0_i32_0 = arith.constant 0 : i32
    %c0_i32_1 = arith.constant 0 : i32
    return %c0_i32, %c0_i32_0 : i32, i32
  }
  func.func @transform_3(%arg0: i32, %arg1: i32) -> (i32, i32) {
    %c0_i32 = arith.constant 0 : i32
    %c0_i32_0 = arith.constant 0 : i32
    %c0_i32_1 = arith.constant 0 : i32
    return %c0_i32, %c0_i32_0 : i32, i32
  }
  func.func @transform_4(%arg0: i32, %arg1: i32) -> (i32, i32) {
    %c0_i32 = arith.constant 0 : i32
    %c0_i32_0 = arith.constant 0 : i32
    %c0_i32_1 = arith.constant 0 : i32
    return %c0_i32, %c0_i32_0 : i32, i32
  }
  func.func @transform_5(%arg0: i32, %arg1: i32) -> (i32, i32, i32) {
    %c0_i32 = arith.constant 0 : i32
    %c0_i32_0 = arith.constant 0 : i32
    return %arg0, %c0_i32, %arg1 : i32, i32, i32
  }
  func.func @transform_6(%arg0: i32, %arg1: i32) -> (i32, i32, i32) {
    %c0_i32 = arith.constant 0 : i32
    %c0_i32_0 = arith.constant 0 : i32
    return %arg0, %c0_i32, %arg1 : i32, i32, i32
  }
}

</mosaic_0001>

<bundles_post_ra>
// kernel: tpu_custom_call.1
= control target key start
LH: loop header
LB: loop body
LE: loop exit
PB: predicated region body
PF: predicated region fallthrough
CT: control target
= control target key end

     0   :  { %12 = vsyncpa [#allocation3], 0  ;;  %s1331_s0 = inlined_call_operand.vmem [shape: bf16[2,32,256], index: 0, kind: input, shape index: {}]   ;;  %s1332_s1 = inlined_call_operand.vmem [shape: bf16[64,32], index: 1, kind: input, shape index: {}]   ;;  %s1333_s2 = inlined_call_operand.vmem [shape: f32[64,1], index: 2, kind: input, shape index: {}]   ;;  %s1334_s3 = inlined_call_operand.vmem [shape: bf16[32,32], index: 3, kind: input, shape index: {}]   ;;  %s1335_s4 = inlined_call_operand.vmem [shape: f32[32,1], index: 4, kind: input, shape index: {}]   ;;  %s1336_s5 = inlined_call_operand.hbm [shape: bf16[2,32,256], index: 5, kind: output, shape index: {0}]   ;;  %s1337_s6 = inlined_call_operand.hbm [shape: bf16[2,32,256], index: 6, kind: output, shape index: {1}]  }
   0x1   :  { %14 = vsyncpa [#allocation3 + $0x1], 0 }
   0x2   :  { %15 = vsyncpa [#allocation5], 0 }
   0x3   :  { %17 = vsyncpa [#allocation5 + $0x1], 0  ;;  %s1097_s21 = smov 0   ;;  %s1099_s22 = smov 0  }
   0x4   :  { %s1101_s23 = smov 0   ;;  %s1103_s24 = smov 0  }
   0x5   :  { %s1105_s25 = smov 0   ;;  %s1107_s26 = smov 0  }
   0x6 LB: > { %s816_s27 = sadd.s32 4294967295, %s1055_s26   ;;  %s817_s28 = sadd.s32 4294967294, %s1055_s26   ;;  %s1055_s26 = sphi %s1107_s26, %s23_s26   ;;  %s1051_s25 = sphi %s1105_s25, %s1346_s25   ;;  %s1047_s24 = sphi %s1103_s24, %s1345_s24   ;;  %s1043_s23 = sphi %s1101_s23, %s1344_s23   ;;  %s1039_s22 = sphi %s1099_s22, %s1343_s22   ;;  %s1035_s21 = sphi %s1097_s21, %s1342_s21  }
   0x7   : > { %s35_s29 = sadd.s32 1, %s1051_s25  ;;  %s156_s30 = sadd.s32 1, %s1043_s23 }
   0x8   : > { %p37_p0 = scmp.ge.s32.totalorder %s35_s29, 2  ;;  %p166_p1 = scmp.ne.s32.totalorder %s1043_s23, %s1039_s22 }
   0x9   : > { %p167_p2 = scmp.eq.s32.totalorder %s816_s27, 1  ;;  %p172_p3 = scmp.ne.s32.totalorder %s1039_s22, %s1035_s21 }
   0xa   : > { %s1348_s29 = smov (%p37_p0, %s35_s29), 0  ;;  %p173_p5 = scmp.eq.s32.totalorder %s817_s28, 1 }
   0xb   : > { %p1137_p4 = por %p167_p2, %p166_p1  ;;  %s151_s8 = ssub.s32 %s1051_s25, %s1348_s29 }
   0xc   : > { %p820_p6 = scmp.ge.s32.totalorder %s1055_s26, 1  ;;  %p154_p7 = scmp.eq.s32.totalorder %s151_s8, 0 }
   0xd   : > { %p1144_p8 = por %p173_p5, %p172_p3  ;;  %p244_p9 = scmp.lt.s32.totalorder %s1055_s26, 3 }
   0xe   : > { %s1150_s10 = scalar_select %p154_p7, %s1043_s23, %s156_s30  }
   0xf   : > { %p245_p10 = pnand %p820_p6, %p244_p9 }
  0x10   : > { %p284_p11 = scmp.lt.s32.totalorder (!%p245_p10), %s1047_s24, 1  ;;  %s1217_s20 = sand.u32 (!%p245_p10), 1, %s1039_s22  }
  0x11   : > { %248 = sbr.rel (%p245_p10) target bundleno = 482 (0x1e2), region = 40  ;;  %s821_s27 = sshll.u32 (!%p245_p10), %s1217_s20, 5 }
  0x12   : > { %s1222_s28 = scalar_lea.vmem (!%p245_p10), [#allocation4], %s821_s27  ;;  %s1338_s14 = sshll.u32 (!%p245_p10), %s1047_s24, 9 }
  0x13   : > { %s702_s13 = sshll.u32 (!%p245_p10), %s1222_s28, 4  ;;  %s1246_s18 = scalar_lea.hbm (!%p245_p10), %s1337_s6, %s1338_s14  ;;  %s1238_s13 = int_to_ptr.vmem [resolvable:$true] %s702_s13 }
  0x14   : > { %s949_s19 = scalar_lea.vmem (!%p245_p10), %s1238_s13, 512  ;;  %s1058_s30 = smov (!%p245_p10), [#allocation4]  }
  0x15   : > { %p950_p12 = scmp.ne.s32.totalorder (!%p245_p10), %s1238_s13, %s949_s19 }
  0x16   : > { %v1057_v0 = vmov 0   ;;  %s285_s11 = scalar_select %p284_p11, %s1047_s24, 1  ;;  %v310_v1 = vld [vmem:[%s1333_s2 + $0x10] sm:$0xff]  ;;  %v308_v2 = vld [vmem:[%s1333_s2] sm:$0xff]  ;;  %v311_v6 = vld [vmem:[%s1333_s2 + $0x18] sm:$0xff]  ;;  %vm396_vm0 = vcmask 261120  }
  0x17   : > { %441 = vmatprep.mubr.bf16.mxu0 %v1057_v0  ;;  %471 = vmatprep.mubr.bf16.mxu1 %v1057_v0  ;;  %v309_v7 = vld [vmem:[%s1333_s2 + $0x8] sm:$0xff]  ;;  %v943_v9 = vld [vmem:[%s1332_s1] sm:$0xff]   ;;  %v945_v10 = vld [vmem:[%s1332_s1 + $0x18] sm:$0xff]   ;;  %p951_p13 = pnand %p950_p12, %p1137_p4 }
  0x18   : > { %935 = vset.pattern.permute.xlu0 %v1057_v0  ;;  %936 = vset.pattern.permute.xlu1 %v1057_v0  ;;  %s857_s12 = sshll.u32 %s285_s11, 5  ;;  %v312_v11 = vld [vmem:[%s1333_s2 + $0x20] sm:$0xff]  ;;  %v313_v12 = vld [vmem:[%s1333_s2 + $0x28] sm:$0xff]  ;;  %v314_v13 = vld [vmem:[%s1333_s2 + $0x30] sm:$0xff] }
  0x19   : > { %s291_s17 = scalar_lea.vmem %s1331_s0, %s857_s12  ;;  %328 = vperm.xlu0 %935, %v310_v1   ;;  %318 = vperm.xlu1 %936, %v308_v2   ;;  %v315_v14 = vld [vmem:[%s1333_s2 + $0x38] sm:$0xff]  ;;  %v944_v15 = vld [vmem:[%s1332_s1 + $0x8] sm:$0xff]   ;;  %v506_v16 = vld [vmem:[%s1335_s4] sm:$0xff]  ;;  %p952_p0 = pneg %p951_p13 }
  0x1a   : > { %v937_v3 = vld [vmem:[%s291_s17 + $0x14] ss:$8 sps:$4 sm:$0xff]   ;;  %v939_v4 = vld [vmem:[%s291_s17 + $0x10] ss:$8 sps:$4 sm:$0xff]   ;;  %v940_v5 = vld [vmem:[%s291_s17 + $0x4] ss:$8 sps:$4 sm:$0xff]  }
  0x1b   : > { %421 = vmatprep.subr.bf16.mxu0 %v937_v3  ;;  %868 = vmatprep.subr.bf16.mxu1 %v937_v3  ;;  %v942_v8 = vld [vmem:[%s291_s17] ss:$8 sps:$4 sm:$0xff]   ;;  %v508_v18 = vld [vmem:[%s1335_s4 + $0x10] sm:$0xff]  ;;  %v509_v19 = vld [vmem:[%s1335_s4 + $0x18] sm:$0xff]  ;;  %s669_s17 = scalar_lea.sflag [#allocation5], %s1217_s20 }
  0x1c   : > { %422 = vmatpush1.bf16.msra.mxu0 %v939_v4  ;;  %870 = vmatpush1.bf16.msra.mxu1 %v939_v4  ;;  %v507_v17 = vld [vmem:[%s1335_s4 + $0x8] sm:$0xff]  ;;  %v946_v20 = vld [vmem:[%s1332_s1 + $0x10] sm:$0xff]  }
  0x1d   : > { %423 = vmatprep.subr.bf16.mxu0 %v940_v5  ;;  %869 = vmatprep.subr.bf16.mxu1 %v940_v5 }
  0x1e   : > { %333 = vperm.xlu0 %935, %v311_v6   ;;  %323 = vperm.xlu1 %936, %v309_v7  }
  0x20   : > { %424 = vmatpush1.bf16.msra.mxu0 %v942_v8  ;;  %871 = vmatpush1.bf16.msra.mxu1 %v942_v8 }
  0x22   : > { %338 = vperm.xlu0 %935, %v312_v11   ;;  %343 = vperm.xlu1 %936, %v313_v12  }
  0x23   : > { %833 = vmatmul.mubr.msk.bf16.vlgmr.msra.gmra.mxu0 %vm396_vm0, %v943_v9  ;;  %836 = vmatmul.mubr.msk.bf16.vlgmr.msra.gmra.mxu1 %vm396_vm0, %v945_v10 }
  0x24   : > { %451 = vmatprep.mubr.bf16.mxu0 %v1057_v0  ;;  %578 = vmatprep.mubr.bf16.mxu1 %v1057_v0 }
  0x26   : > { %348 = vperm.xlu0 %935, %v314_v13   ;;  %353 = vperm.xlu1 %936, %v315_v14  }
  0x2a   : > { %512 = vperm.xlu0 %935, %v506_v16   ;;  %517 = vperm.xlu1 %936, %v507_v17  }
  0x2b   : > { %834 = vmatmul.mubr.msk.bf16.gmra.mxu0 %vm396_vm0, %v944_v15 }
  0x2c   : > { %461 = vmatprep.mubr.bf16.mxu0 %v1057_v0 }
  0x2e   : > { %522 = vperm.xlu0 %935, %v508_v18   ;;  %527 = vperm.xlu1 %936, %v509_v19  }
  0x33   : > { %835 = vmatmul.mubr.msk.bf16.gmra.mxu0 %vm396_vm0, %v946_v20 }
  0x94   : > { %v329_v21 = vpop.permute.xlu0 %328  ;;  %v319_v22 = vpop.permute.xlu1 %318 }
  0x99   : > { %v334_v23 = vpop.permute.xlu0 %333  ;;  %v324_v24 = vpop.permute.xlu1 %323 }
  0x9d   : > { %v339_v25 = vpop.permute.xlu0 %338  ;;  %v344_v26 = vpop.permute.xlu1 %343 }
  0xa1   : > { %v349_v27 = vpop.permute.xlu0 %348  ;;  %v354_v33 = vpop.permute.xlu1 %353 }
  0xe3   : > { %v443_v28 = vpop.f32.mrf.mxu0  ;;  %v473_v29 = vpop.f32.mrf.mxu1 }
  0xe4   : > { %v474_v30 = vadd.f32 %v473_v29, %v349_v27  ;;  %v444_v1 = vadd.f32 %v443_v28, %v319_v22 }
  0xe5   : > { %v445_v31 = vpop.f32.mrf.mxu0  ;;  %v475_v32 = vpop.f32.mrf.mxu1 }
  0xe6   : > { %v494_v34 = vmax.f32 %v474_v30, 0.0  ;;  %v476_v35 = vadd.f32 %v475_v32, %v349_v27  ;;  %v446_v55 = vadd.f32 %v445_v31, %v319_v22  ;;  %v482_v14 = vmax.f32 %v444_v1, 0.0 }
  0xe7   : > { %v447_v36 = vpop.f32.mrf.mxu0  ;;  %v477_v37 = vpop.f32.mrf.mxu1 }
  0xe8   : > { %v495_v38 = vmax.f32 %v476_v35, 0.0  ;;  %v478_v39 = vadd.f32 %v477_v37, %v354_v33  ;;  %v448_v57 = vadd.f32 %v447_v36, %v324_v24  ;;  %v483_v4 = vmax.f32 %v446_v55, 0.0 }
  0xe9   : > { %v449_v40 = vpop.f32.mrf.mxu0  ;;  %v479_v41 = vpop.f32.mrf.mxu1 }
  0xea   : > { %v864_v42 = vpack.c.bf16 %v495_v38, %v494_v34  ;;  %v496_v44 = vmax.f32 %v478_v39, 0.0  ;;  %v480_v45 = vadd.f32 %v479_v41, %v354_v33  ;;  %v450_v50 = vadd.f32 %v449_v40, %v324_v24 }
  0xeb   : > { %v453_v43 = vpop.f32.mrf.mxu0  ;;  %v484_v7 = vmax.f32 %v448_v57, 0.0 }
  0xec   : > { %661 = vst [vmem:[%s1222_s28 + $0x10] sm:$0xff] %v864_v42  ;;  %v497_v47 = vmax.f32 %v480_v45, 0.0  ;;  %v454_v53 = vadd.f32 %v453_v43, %v329_v21  ;;  %v485_v60 = vmax.f32 %v450_v50, 0.0 }
  0xed   : > { %v455_v46 = vpop.f32.mrf.mxu0  ;;  %v502_v18 = vpack.c.bf16 %v484_v7, %v482_v14 }
  0xee   : > { %v865_v49 = vpack.c.bf16 %v497_v47, %v496_v44  ;;  %v456_v51 = vadd.f32 %v455_v46, %v329_v21  ;;  %v486_v2 = vmax.f32 %v454_v53, 0.0  ;;  %v503_v10 = vpack.c.bf16 %v485_v60, %v483_v4  ;;  %v947_v21 = vld [vmem:[%s1334_s3] sm:$0xff]  }
  0xef   : > { %v457_v48 = vpop.f32.mrf.mxu0 }
  0xf0   : > { %v458_v52 = vadd.f32 %v457_v48, %v334_v23  ;;  %662 = vst [vmem:[%s1222_s28 + $0x18] sm:$0xff] %v865_v49  ;;  %v487_v61 = vmax.f32 %v456_v51, 0.0 }
  0xf1   : > { %v459_v54 = vpop.f32.mrf.mxu0 }
  0xf2   : > { %v460_v56 = vadd.f32 %v459_v54, %v334_v23  ;;  %v488_v58 = vmax.f32 %v458_v52, 0.0  ;;  %v948_v23 = vld [vmem:[%s1334_s3 + $0x8] sm:$0xff]  }
  0xf3   : > { %v463_v59 = vpop.f32.mrf.mxu0 }
  0xf4   : > { %v489_v62 = vmax.f32 %v460_v56, 0.0  ;;  %v464_v63 = vadd.f32 %v463_v59, %v339_v25  ;;  %v504_v8 = vpack.c.bf16 %v488_v58, %v486_v2 }
  0xf5   : > { %v465_v3 = vpop.f32.mrf.mxu0 }
  0xf6   : > { %v505_v5 = vpack.c.bf16 %v489_v62, %v487_v61  ;;  %v466_v6 = vadd.f32 %v465_v3, %v339_v25  ;;  %v490_v11 = vmax.f32 %v464_v63, 0.0 }
  0xf7   : > { %v467_v9 = vpop.f32.mrf.mxu0 }
  0xf8   : > { %v491_v12 = vmax.f32 %v466_v6, 0.0  ;;  %v468_v13 = vadd.f32 %v467_v9, %v344_v26  ;;  %558 = vmatprep.subr.bf16.mxu1 %v505_v5 }
  0xf9   : > { %v469_v15 = vpop.f32.mrf.mxu0  ;;  %559 = vmatpush1.bf16.msra.mxu1 %v504_v8 }
  0xfa   : > { %v862_v16 = vpack.c.bf16 %v491_v12, %v490_v11  ;;  %v470_v17 = vadd.f32 %v469_v15, %v344_v26  ;;  %560 = vmatprep.subr.bf16.mxu1 %v503_v10  ;;  %v492_v19 = vmax.f32 %v468_v13, 0.0 }
  0xfc   : > { %659 = vst [vmem:[%s1222_s28] sm:$0xff] %v862_v16  ;;  %v493_v20 = vmax.f32 %v470_v17, 0.0 }
  0xfd   : > { %561 = vmatpush1.bf16.msra.mxu1 %v502_v18 }
  0xfe   : > { %v863_v22 = vpack.c.bf16 %v493_v20, %v492_v19 }
 0x100   : > { %660 = vst [vmem:[%s1222_s28 + $0x8] sm:$0xff] %v863_v22  ;;  %839 = vmatmul.mubr.msk.bf16.vlgmr.msra.gmra.mxu1 %vm396_vm0, %v947_v21  ;;  %s953_s28 = sshll.u32 %s1058_s30, 4  ;;  %s954_s28 = int_to_ptr.vmem [resolvable:$false] %s953_s28 }
 0x101   : > { %588 = vmatprep.mubr.bf16.mxu1 %v1057_v0  ;;  %s955_s8 = scalar_lea.vmem %s954_s28, 1024  ;;  %p956_p1 = scmp.lt.s32.totalorder %s1238_s13, %s954_s28 }
 0x102   : > { %p957_p2 = scmp.lt.s32.totalorder %s955_s8, %s949_s19 }
 0x104   : > { %p958_p3 = por %p957_p2, %p956_p1 }
 0x106   : > { %p959_p5 = pnand %p958_p3, %p952_p0 }
 0x108   : > { %840 = vmatmul.mubr.msk.bf16.gmra.mxu1 %vm396_vm0, %v948_v23 }
 0x109   : > { %962 = shalt.err (!%p959_p5)
}
 0x10a   : > { %s963_s11 = scalar_lea.hbm %s1246_s18, 512  ;;  %s967_s16 = scalar_lea.hbm %s1337_s6, 1024 }
 0x10b   : > { %p964_p6 = scmp.ne.s32.totalorder %s1246_s18, %s963_s11  ;;  %p968_p10 = scmp.lt.s32.totalorder %s1246_s18, %s1337_s6 }
 0x10c   : > { %p969_p11 = scmp.lt.s32.totalorder %s967_s16, %s963_s11 }
 0x10d   : > { %p965_p7 = pnand %p964_p6, %p1137_p4 }
 0x10e   : > { %p970_p12 = por %p969_p11, %p968_p10 }
 0x10f   : > { %p966_p9 = pneg %p965_p7 }
 0x111   : > { %p971_p13 = pnand %p970_p12, %p966_p9 }
 0x113   : > { %974 = shalt.err (!%p971_p13)
}
 0x114   : > { %s1059_s19 = smov 128   ;;  %s1060_s28 = smov 8   ;;  %v513_v0 = vpop.permute.xlu0 %512  ;;  %v518_v28 = vpop.permute.xlu1 %517 }
 0x115   : > { %873 = dma.vmem_to_hbm [thread:$0]  (%p1137_p4), %s1238_s13, 512, %s1246_s18, %s669_s17, %s1059_s19, %s1059_s19, %s1060_s28  }
 0x116   : > { %s275_s14 = scalar_lea.vmem [#allocation2], %s821_s27  ;;  %s1341_s13 = sshll.u32 %s1047_s24, 9 }
 0x117   : > { %s684_s27 = sshll.u32 %s275_s14, 4  ;;  %s1283_s8 = scalar_lea.hbm %s1336_s5, %s1341_s13  ;;  %s1276_s27 = int_to_ptr.vmem [resolvable:$true] %s684_s27 }
 0x118   : > { %v523_v36 = vpop.permute.xlu0 %522  ;;  %v528_v44 = vpop.permute.xlu1 %527  ;;  %s664_s11 = scalar_lea.sflag [#allocation3], %s1217_s20  ;;  %s975_s12 = scalar_lea.vmem %s1276_s27, 512 }
 0x119   : > { %p976_p0 = scmp.ne.s32.totalorder %s1276_s27, %s975_s12  ;;  %s1061_s15 = smov [#allocation2]  }
 0x11a   : > { %s979_s16 = sshll.u32 %s1061_s15, 4  ;;  %s980_s16 = int_to_ptr.vmem [resolvable:$false] %s979_s16 }
 0x11b   : > { %p977_p1 = pnand %p976_p0, %p1137_p4  ;;  %s981_s30 = scalar_lea.vmem %s980_s16, 1024 }
 0x11c   : > { %p982_p3 = scmp.lt.s32.totalorder %s1276_s27, %s980_s16  ;;  %p983_p5 = scmp.lt.s32.totalorder %s981_s30, %s975_s12 }
 0x11d   : > { %p978_p2 = pneg %p977_p1 }
 0x11e   : > { %p984_p6 = por %p983_p5, %p982_p3 }
 0x120   : > { %p985_p7 = pnand %p984_p6, %p978_p2 }
 0x1c0   : > { %v580_v24 = vpop.f32.mrf.mxu1 }
 0x1c1   : > { %v581_v25 = vadd.f32 %v580_v24, %v513_v0 }
 0x1c2   : > { %v582_v26 = vpop.f32.mrf.mxu1 }
 0x1c3   : > { %v583_v27 = vadd.f32 %v582_v26, %v513_v0  ;;  %v599_v30 = vmax.f32 %v581_v25, 0.0 }
 0x1c4   : > { %v584_v29 = vpop.f32.mrf.mxu1 }
 0x1c5   : > { %v600_v31 = vmax.f32 %v583_v27, 0.0  ;;  %v585_v32 = vadd.f32 %v584_v29, %v518_v28 }
 0x1c6   : > { %v586_v33 = vpop.f32.mrf.mxu1 }
 0x1c7   : > { %v858_v34 = vpack.c.bf16 %v600_v31, %v599_v30  ;;  %v587_v35 = vadd.f32 %v586_v33, %v518_v28  ;;  %v601_v38 = vmax.f32 %v585_v32, 0.0 }
 0x1c8   : > { %v590_v37 = vpop.f32.mrf.mxu1 }
 0x1c9   : > { %631 = vst [vmem:[%s275_s14] sm:$0xff] %v858_v34  ;;  %v602_v39 = vmax.f32 %v587_v35, 0.0  ;;  %v591_v40 = vadd.f32 %v590_v37, %v523_v36 }
 0x1ca   : > { %v592_v41 = vpop.f32.mrf.mxu1 }
 0x1cb   : > { %v859_v42 = vpack.c.bf16 %v602_v39, %v601_v38  ;;  %v593_v43 = vadd.f32 %v592_v41, %v523_v36  ;;  %v603_v46 = vmax.f32 %v591_v40, 0.0 }
 0x1cc   : > { %v594_v45 = vpop.f32.mrf.mxu1 }
 0x1cd   : > { %632 = vst [vmem:[%s275_s14 + $0x8] sm:$0xff] %v859_v42  ;;  %v604_v47 = vmax.f32 %v593_v43, 0.0  ;;  %v595_v48 = vadd.f32 %v594_v45, %v528_v44 }
 0x1ce   : > { %v596_v49 = vpop.f32.mrf.mxu1 }
 0x1cf   : > { %v860_v50 = vpack.c.bf16 %v604_v47, %v603_v46  ;;  %v597_v51 = vadd.f32 %v596_v49, %v528_v44  ;;  %v605_v52 = vmax.f32 %v595_v48, 0.0 }
 0x1d1   : > { %633 = vst [vmem:[%s275_s14 + $0x10] sm:$0xff] %v860_v50  ;;  %v606_v53 = vmax.f32 %v597_v51, 0.0 }
 0x1d3   : > { %v861_v54 = vpack.c.bf16 %v606_v53, %v605_v52 }
 0x1d5   : > { %634 = vst [vmem:[%s275_s14 + $0x18] sm:$0xff] %v861_v54 }
 0x1d6   : > { %988 = shalt.err (!%p985_p7)
}
 0x1d7   : > { %s989_s24 = scalar_lea.hbm %s1283_s8, 512  ;;  %s993_s13 = scalar_lea.hbm %s1336_s5, 1024 }
 0x1d8   : > { %p990_p9 = scmp.ne.s32.totalorder %s1283_s8, %s989_s24  ;;  %p994_p12 = scmp.lt.s32.totalorder %s1283_s8, %s1336_s5 }
 0x1d9   : > { %p995_p13 = scmp.lt.s32.totalorder %s993_s13, %s989_s24 }
 0x1da   : > { %p991_p10 = pnand %p990_p9, %p1137_p4 }
 0x1db   : > { %p996_p0 = por %p995_p13, %p994_p12 }
 0x1dc   : > { %p992_p11 = pneg %p991_p10 }
 0x1de   : > { %p997_p1 = pnand %p996_p0, %p992_p11 }
 0x1e0   : > { %1000 = shalt.err (!%p997_p1)
}
 0x1e1   : > { %872 = dma.vmem_to_hbm [thread:$0]  (%p1137_p4), %s1276_s27, 512, %s1283_s8, %s664_s11, %s1059_s19, %s1059_s19, %s1060_s28  }
 0x1e2 PF: > { %p883_p2 = scmp.ge.s32.totalorder %s1055_s26, 2  ;;  %s717_s12 = sand.u32 1, %s1035_s21  }
 0x1e3   : > { %s718_s15 = scalar_lea.sflag [#allocation3], %s717_s12 }
 0x1e4   : > { %p877_p3 = pnand %p883_p2, %p1144_p8 }
 0x1e6   : > { %p878_p5 = pneg %p877_p3 }
 0x1e8   : > { %1026 = dma.done.wait (%p878_p5), %s718_s15, 512  }
 0x1e9   : > { %1028 = vsyncadd (%p878_p5), %s718_s15, 4294966784  ;;  %s727_s16 = scalar_lea.sflag [#allocation5], %s717_s12 }
 0x1ea   : > { %1030 = dma.done.wait (%p878_p5), %s727_s16, 512  }
 0x1eb   : > { %1032 = vsyncadd (%p878_p5), %s727_s16, 4294966784  ;;  %s23_s26 = sadd.s32 1, %s1055_s26   ;;  %s1342_s21 = smov %s1039_s22 }
 0x1ec   : > { %p20_p6 = scmp.ge.s32.totalorder %s23_s26, 4   ;;  %s1343_s22 = smov %s1043_s23 }
 0x1ed   : > { %s1344_s23 = smov %s1150_s10  ;;  %s1345_s24 = smov %s1051_s25 }
 0x1ee   : > { %s1346_s25 = smov %s1348_s29  ;;  %22 = sbr.rel (!%p20_p6) target bundleno = 6 (0x6), region = 92 }
 0x1f3   :  { %732 = vsyncpa [#allocation3], 1 }
 0x1f4   :  { %734 = vsyncpa [#allocation3 + $0x1], 1 }
 0x1f5   :  { %735 = vsyncpa [#allocation5], 1 }
 0x1f6   :  { %737 = vsyncpa [#allocation5 + $0x1], 1 }

</bundles_post_ra>
